<compile_context>
chip_gen: v5e
topology: v5e:2x2
jax: 0.10.0
libtpu: 0.0.40
codegen_flags: <defaults>
</compile_context>

<pallas_src>
import functools
import math

import numpy as np
import jax
import jax.numpy as jnp
from jax.experimental import pallas as pl
from jax.experimental.pallas import tpu as pltpu

_VMEM = pl.BlockSpec(memory_space=pltpu.MemorySpace.VMEM)

NTYPES = ('go_annotation', 'protein')          # DGL hg.ntypes (sorted)


def _full_vmem_call(kernel, out_shape, *args):
    """pallas_call with whole-array VMEM blocks (small operands only)."""
    if isinstance(out_shape, (tuple, list)):
        out_specs = tuple(_VMEM for _ in out_shape)
    else:
        out_specs = _VMEM
    return pl.pallas_call(
        kernel,
        out_shape=out_shape,
        in_specs=[_VMEM] * len(args),
        out_specs=out_specs,
    )(*args)


# ------------------------------------------------------------------ kernels --
def _fc1_l2norm_kernel(x_ref, wt_ref, b_ref, o_ref):
    # dropout(l2_norm(fc1(x)))  with dropout = identity (eval mode)
    y = jnp.dot(x_ref[...].astype(jnp.bfloat16), wt_ref[...],
                preferred_element_type=jnp.float32) + b_ref[...]
    n2 = jnp.sum(y * y, axis=1, keepdims=True)
    # x / max(||x||, 1e-12)  ==  x * rsqrt(max(||x||^2, 1e-24))
    o_ref[...] = y * jax.lax.rsqrt(jnp.maximum(n2, 1e-24))


def _relation_kernel(at_ref, hs_ref, hd_ref, wl_ref, bl_ref, wr_ref, br_ref,
                     e_ref, cnt_ref):
    # TypeAttention, one relation (src type -> dst type):
    #   rst = D_in^{-1/2} A^T D_out^{-1/2} h_src     (degrees clamped >= 1)
    #   e   = ELU(mu_l[dt](h_dst) + mu_r[st](rst))   (one value per dst node)
    # at_ref is the relation adjacency, destination-major: at[d, s] = 1 iff s->d.
    at = at_ref[...]                                              # [Nd, Ns]
    hs = hs_ref[...]                                              # [Ns, D]
    cnt = jnp.sum(at, axis=1, keepdims=True)                      # in-degree [Nd, 1]
    cnt_ref[...] = cnt
    out_deg = jnp.maximum(jnp.sum(at, axis=0, keepdims=True), 1.0)  # [1, Ns]
    at_n = at * jax.lax.rsqrt(out_deg)                            # scale columns
    rst = jnp.dot(at_n.astype(jnp.bfloat16), hs.astype(jnp.bfloat16),
                  preferred_element_type=jnp.float32)             # [Nd, D]
    rst = rst * jax.lax.rsqrt(jnp.maximum(cnt, 1.0))
    h_l = jnp.dot(hd_ref[...].astype(jnp.bfloat16), wl_ref[...],
                  preferred_element_type=jnp.float32) + bl_ref[...]
    h_r = jnp.dot(rst.astype(jnp.bfloat16), wr_ref[...],
                  preferred_element_type=jnp.float32) + br_ref[...]
    s = h_l + h_r
    # ELU, with the exp argument clamped so the unselected branch never overflows
    e_ref[...] = jnp.where(s > 0.0, s, jnp.exp(jnp.minimum(s, 0.0)) - 1.0)


def _type_softmax_kernel(egp_ref, cgp_ref, epp_ref, cpp_ref, apgt_ref,
                         ago_ref, apr_ref, *, n_go):
    # Heterogeneous edge_softmax collapsed per destination node: every edge of
    # a relation carries the same logit e_rel[dst], so
    #   den[d] = sum_rel cnt_rel[d] * exp(e_rel[d] - max[d]).
    # Outputs: alpha per (source node type, destination node), shape [N, D].
    neg = jnp.float32(-1e30)
    egp = egp_ref[...]            # protein dsts, src type go_annotation  [Np, D]
    cgp = cgp_ref[...]            # and its per-dst edge count            [Np, 1]
    epp = epp_ref[...]            # protein dsts, src type protein
    cpp = cpp_ref[...]
    has_gp = cgp > 0.0
    has_pp = cpp > 0.0
    mx = jnp.maximum(jnp.where(has_gp, egp, neg), jnp.where(has_pp, epp, neg))
    pgp = jnp.where(has_gp, jnp.exp(jnp.minimum(egp - mx, 0.0)), 0.0)
    ppp = jnp.where(has_pp, jnp.exp(jnp.minimum(epp - mx, 0.0)), 0.0)
    inv = pl.reciprocal(jnp.maximum(cgp * pgp + cpp * ppp, 1e-30), approx=True)
    d = egp.shape[1]

    # alpha of edges whose source type is go_annotation (only go->protein rel)
    ago_ref[:n_go, :] = jnp.zeros((n_go, d), jnp.float32)   # GO dsts: no such edges
    ago_ref[n_go:, :] = pgp * inv                           # protein dsts

    # alpha of edges whose source type is protein
    # GO destinations receive edges from exactly one relation (protein->go),
    # so the softmax over their incoming edges is uniform: 1 / in_degree.
    cpg = jnp.sum(apgt_ref[...], axis=1, keepdims=True)     # [Ng, 1]
    a_pg = jnp.where(cpg > 0.0,
                     pl.reciprocal(jnp.maximum(cpg, 1.0), approx=True), 0.0)
    apr_ref[:n_go, :] = jnp.broadcast_to(a_pg, (n_go, d))   # GO dsts
    apr_ref[n_go:, :] = ppp * inv                           # protein dsts


def _dual_linear_kernel(x_ref, wl_ref, bl_ref, wr_ref, br_ref, ol_ref, or_ref):
    # NodeAttention Mu_l(x) and Mu_r(x) in one launch (x loaded once).
    xb = x_ref[...].astype(jnp.bfloat16)
    ol_ref[...] = jnp.dot(xb, wl_ref[...],
                          preferred_element_type=jnp.float32) + bl_ref[...]
    or_ref[...] = jnp.dot(xb, wr_ref[...],
                          preferred_element_type=jnp.float32) + br_ref[...]


def _node_attn_fc_kernel(hl_ref, hr_ref, x_ref, ago_ref, apr_ref, adj_ref,
                         wfc_ref, bfc_ref, o_ref, *, n_go, slope):
    # Fused NodeAttention + bn-folded output fc for one tile of destinations:
    #   e      = leaky_relu(((Mu_l x)[src] + (Mu_r x)[dst]) * alpha_edge)
    #   att    = edge_softmax(e)                  (per destination node)
    #   h[d]   = sum_src x[src] * att[src, d]
    #   out[d] = h[d] @ W_fc + b_fc
    neg = jnp.float32(-1e30)
    hr = hr_ref[...]                               # [1, TD, D]  (this dst tile)
    a_go = ago_ref[...]                            # [1, TD, D]  alpha, src type GO
    a_pr = apr_ref[...]                            # [1, TD, D]  alpha, src type protein
    hl = hl_ref[...]                               # [N, 1, D]   (all sources)
    x = x_ref[...]                                 # [N, 1, D]
    edge = adj_ref[...] > 0.0                      # [N, TD, 1]
    ed_g, ed_p = edge[:n_go], edge[n_go:]

    def logits(hl_part, alpha):
        e = (hl_part + hr) * alpha
        return jnp.where(e >= 0.0, e, slope * e)   # LeakyReLU

    e_g = logits(hl[:n_go], a_go)                  # GO sources      [Ng, TD, D]
    e_p = logits(hl[n_go:], a_pr)                  # protein sources [Np, TD, D]
    em_g = jnp.where(ed_g, e_g, neg)
    em_p = jnp.where(ed_p, e_p, neg)
    mx = jnp.maximum(jnp.max(em_g, axis=0, keepdims=True),
                     jnp.max(em_p, axis=0, keepdims=True))        # [1, TD, D]
    p_g = jnp.where(ed_g, jnp.exp(jnp.minimum(em_g - mx, 0.0)), 0.0)
    p_p = jnp.where(ed_p, jnp.exp(jnp.minimum(em_p - mx, 0.0)), 0.0)
    den = (jnp.sum(p_g, axis=0, keepdims=True)
           + jnp.sum(p_p, axis=0, keepdims=True))
    inv = pl.reciprocal(jnp.maximum(den, 1e-30), approx=True)
    h = (jnp.sum(x[:n_go] * (p_g * inv), axis=0)
         + jnp.sum(x[n_go:] * (p_p * inv), axis=0))               # [TD, D]
    # fused output projection (eval BatchNorm folded into W/b)
    o_ref[...] = jnp.dot(h.astype(jnp.bfloat16), wfc_ref[...],
                         preferred_element_type=jnp.float32) + bfc_ref[...]


# -------------------------------------------------------------------- model --
def _init_linear(key, in_dim, out_dim):
    # Weights are stored pre-transposed ([in, out]) and biases as [1, out].
    kw, kb = jax.random.split(key)
    bound = 1.0 / math.sqrt(in_dim)
    return {
        'wt': jax.random.uniform(kw, (in_dim, out_dim), jnp.float32, -bound, bound),
        'b': jax.random.uniform(kb, (1, out_dim), jnp.float32, -bound, bound),
    }


def init_params(key, feature_dim, num_classes, hidden_dim):
    keys = jax.random.split(key, 9)
    return {
        'fc1': {'protein': _init_linear(keys[0], feature_dim, hidden_dim),
                'go_annotation': _init_linear(keys[1], num_classes, hidden_dim)},
        # TypeAttention HeteroLinear: one Linear(hidden, hidden) per ntype
        'mu_l': {nt: _init_linear(k, hidden_dim, hidden_dim)
                 for nt, k in zip(NTYPES, keys[2:4])},
        'mu_r': {nt: _init_linear(k, hidden_dim, hidden_dim)
                 for nt, k in zip(NTYPES, keys[4:6])},
        # NodeAttention linears
        'Mu_l': _init_linear(keys[6], hidden_dim, hidden_dim),
        'Mu_r': _init_linear(keys[7], hidden_dim, hidden_dim),
        # output projection
        'fc': _init_linear(keys[8], hidden_dim, num_classes),
    }


def hgat_forward(params, h_dict_in, adj, n_go, n_prot,
                 negative_slope=0.2, dst_tile=8):
    n = n_go + n_prot
    bf = lambda w: w.astype(jnp.bfloat16)

    # --- input projection: dropout(l2_norm(fc1[ntype](x)))  (dropout = id) ---
    h = {}
    for nt in NTYPES:
        p = params['fc1'][nt]
        h[nt] = _full_vmem_call(
            _fc1_l2norm_kernel,
            jax.ShapeDtypeStruct((h_dict_in[nt].shape[0], p['wt'].shape[1]),
                                 jnp.float32),
            h_dict_in[nt], bf(p['wt']), p['b'])
    h_go, h_pr = h['go_annotation'], h['protein']
    hd = h_go.shape[1]

    # ------------------- layer 0: TypeAttention (per relation) ----------------
    adj_t = adj.T                       # destination-major adjacency (one transpose)
    at_gp = adj_t[n_go:, :n_go]         # go_annotation -> protein   [Np, Ng]
    at_pp = adj_t[n_go:, n_go:]         # protein       -> protein   [Np, Np]
    at_pg = adj_t[:n_go, n_go:]         # protein -> go_annotation   [Ng, Np]

    def relation(at_rel, h_src, h_dst, wl, wr):
        nd = at_rel.shape[0]
        return _full_vmem_call(
            _relation_kernel,
            (jax.ShapeDtypeStruct((nd, hd), jnp.float32),
             jax.ShapeDtypeStruct((nd, 1), jnp.float32)),
            at_rel, h_src, h_dst, bf(wl['wt']), wl['b'], bf(wr['wt']), wr['b'])

    e_gp, cnt_gp = relation(at_gp, h_go, h_pr,
                            params['mu_l']['protein'],
                            params['mu_r']['go_annotation'])
    e_pp, cnt_pp = relation(at_pp, h_pr, h_pr,
                            params['mu_l']['protein'],
                            params['mu_r']['protein'])

    # hetero edge_softmax collapsed to per-(source-type, destination) weights
    alpha_go_src, alpha_pr_src = _full_vmem_call(
        functools.partial(_type_softmax_kernel, n_go=n_go),
        (jax.ShapeDtypeStruct((n, hd), jnp.float32),
         jax.ShapeDtypeStruct((n, hd), jnp.float32)),
        e_gp, cnt_gp, e_pp, cnt_pp, at_pg)

    # ------------------- dgl.to_homogeneous + NodeAttention linears -----------
    x = jnp.concatenate([h_go, h_pr], axis=0)                       # [N, D]
    h_l, h_r = _full_vmem_call(
        _dual_linear_kernel,
        (jax.ShapeDtypeStruct((n, hd), jnp.float32),
         jax.ShapeDtypeStruct((n, hd), jnp.float32)),
        x, bf(params['Mu_l']['wt']), params['Mu_l']['b'],
        bf(params['Mu_r']['wt']), params['Mu_r']['b'])

    # ------------------- fused NodeAttention + bn(fc(.)) ----------------------
    bn_scale = jnp.float32(1.0 / math.sqrt(1.0 + 1e-5))  # eval BN: mean=0, var=1
    w_fc = (params['fc']['wt'] * bn_scale).astype(jnp.bfloat16)     # [D, C]
    b_fc = params['fc']['b'] * bn_scale                             # [1, C]
    num_classes = w_fc.shape[1]
    td = dst_tile if (dst_tile % 8 == 0 and n % dst_tile == 0) else n

    out = pl.pallas_call(
        functools.partial(_node_attn_fc_kernel, n_go=n_go, slope=negative_slope),
        out_shape=jax.ShapeDtypeStruct((n, num_classes), jnp.float32),
        grid=(n // td,),
        in_specs=[
            pl.BlockSpec((n, 1, hd), lambda j: (0, 0, 0)),       # h_l   (sources)
            pl.BlockSpec((1, td, hd), lambda j: (0, j, 0)),      # h_r   (dst tile)
            pl.BlockSpec((n, 1, hd), lambda j: (0, 0, 0)),       # x     (sources)
            pl.BlockSpec((1, td, hd), lambda j: (0, j, 0)),      # alpha, src = GO
            pl.BlockSpec((1, td, hd), lambda j: (0, j, 0)),      # alpha, src = protein
            pl.BlockSpec((n, td, 1), lambda j: (0, j, 0)),       # adjacency mask
            pl.BlockSpec((hd, num_classes), lambda j: (0, 0)),   # fc weight (bn folded)
            pl.BlockSpec((1, num_classes), lambda j: (0, 0)),    # fc bias
        ],
        out_specs=pl.BlockSpec((td, num_classes), lambda j: (j, 0)),
        compiler_params=pltpu.CompilerParams(
            dimension_semantics=("parallel",)),   # megacore sharding on v7x
    )(h_l.reshape(n, 1, hd), h_r.reshape(1, n, hd), x.reshape(n, 1, hd),
      alpha_go_src.reshape(1, n, hd), alpha_pr_src.reshape(1, n, hd),
      adj[..., None], w_fc, b_fc)

    # ------------------- to_hetero_feat ---------------------------------------
    return {'go_annotation': out[:n_go], 'protein': out[n_go:]}


if __name__ == "__main__":
    N_GO, N_PROT = 8, 8
    FEATURE_DIM, NUM_CLASSES, HIDDEN_DIM = 16, 8, 128   # lane-dense hidden dim
    N = N_GO + N_PROT

    # deterministic synthetic heterogeneous graph (dense adjacency mask,
    # homogeneous node order: go_annotation rows [0, N_GO), protein rows after)
    adj_np = np.zeros((N, N), np.float32)
    for i in range(N_PROT):
        p = N_GO + i
        adj_np[p, N_GO + (i + 1) % N_PROT] = 1.0      # protein -> protein
        adj_np[p, N_GO + (i + 3) % N_PROT] = 1.0
        adj_np[p, i % N_GO] = 1.0                     # protein -> go_annotation
        adj_np[p, (i + 2) % N_GO] = 1.0
    for j in range(N_GO):
        adj_np[j, N_GO + (j % N_PROT)] = 1.0          # go_annotation -> protein
        adj_np[j, N_GO + ((2 * j + 1) % N_PROT)] = 1.0
    adj = jnp.asarray(adj_np)

    key = jax.random.PRNGKey(0)
    k_feat_p, k_feat_g, k_params = jax.random.split(key, 3)
    h_dict_in = {
        'protein': jax.random.normal(k_feat_p, (N_PROT, FEATURE_DIM), jnp.float32),
        'go_annotation': jax.random.normal(k_feat_g, (N_GO, NUM_CLASSES), jnp.float32),
    }
    params = init_params(k_params, FEATURE_DIM, NUM_CLASSES, HIDDEN_DIM)

    out = hgat_forward(params, h_dict_in, adj, N_GO, N_PROT)
    out = jax.block_until_ready(out)
    assert out['protein'].shape == (N_PROT, NUM_CLASSES)
    assert out['go_annotation'].shape == (N_GO, NUM_CLASSES)
    assert all(bool(jnp.all(jnp.isfinite(v))) for v in out.values())
    print("KERNEL_OK")
</pallas_src>

<mosaic_0001>
module attributes {stable_mosaic.version = 11 : i64} {
  func.func @_fc1_l2norm_kernel(%arg0: memref<8x8xf32, #tpu.memory_space<vmem>>, %arg1: memref<8x128xbf16, #tpu.memory_space<vmem>>, %arg2: memref<1x128xf32, #tpu.memory_space<vmem>>, %arg3: memref<8x128xf32, #tpu.memory_space<vmem>>) attributes {dimension_semantics = [], scalar_prefetch = 0 : i64, scratch_operands = 0 : i64, tpu.core_type = #tpu.core_type<tc>} {
    %c0 = arith.constant 0 : index
    %c0_0 = arith.constant 0 : index
    %0 = vector.load %arg0[%c0, %c0_0] : memref<8x8xf32, #tpu.memory_space<vmem>>, vector<8x8xf32>
    %1 = arith.truncf %0 : vector<8x8xf32> to vector<8x8xbf16>
    %c0_1 = arith.constant 0 : index
    %c0_2 = arith.constant 0 : index
    %2 = vector.load %arg1[%c0_1, %c0_2] : memref<8x128xbf16, #tpu.memory_space<vmem>>, vector<8x128xbf16>
    %cst = arith.constant dense<0.000000e+00> : vector<8x128xf32>
    %3 = tpu.matmul %1, %2, %cst {dimension_numbers = #tpu.dot_dimension_numbers<[1], [0], [0], [1], [0, 0, 1, 1], [], []>} : vector<8x8xbf16>, vector<8x128xbf16>, vector<8x128xf32> -> vector<8x128xf32>
    %c0_3 = arith.constant 0 : index
    %c0_4 = arith.constant 0 : index
    %4 = vector.load %arg2[%c0_3, %c0_4] : memref<1x128xf32, #tpu.memory_space<vmem>>, vector<1x128xf32>
    %5 = vector.broadcast %4 : vector<1x128xf32> to vector<8x128xf32>
    %6 = arith.addf %3, %5 : vector<8x128xf32>
    %7 = arith.mulf %6, %6 : vector<8x128xf32>
    %cst_5 = arith.constant dense<0.000000e+00> : vector<8xf32>
    %8 = vector.multi_reduction <add>, %7, %cst_5 [1] : vector<8x128xf32> to vector<8xf32>
    %9 = vector.shape_cast %8 : vector<8xf32> to vector<8x1xf32>
    %cst_6 = arith.constant 1.000000e-24 : f32
    %10 = vector.broadcast %cst_6 : f32 to vector<8x1xf32>
    %11 = arith.maximumf %9, %10 : vector<8x1xf32>
    %12 = math.rsqrt %11 : vector<8x1xf32>
    %13 = vector.broadcast %12 : vector<8x1xf32> to vector<8x128xf32>
    %14 = arith.mulf %6, %13 : vector<8x128xf32>
    %c0_7 = arith.constant 0 : index
    %c0_8 = arith.constant 0 : index
    %15 = vector.load %arg3[%c0_7, %c0_8] : memref<8x128xf32, #tpu.memory_space<vmem>>, vector<8x128xf32>
    tpu.vector_store %arg3[%c0_7, %c0_8], %14 {strides = array<i32>} : memref<8x128xf32, #tpu.memory_space<vmem>>, vector<8x128xf32>,
    return
  }
}

</mosaic_0001>

<bundles_post_ra>
// kernel: tpu_custom_call.1
= control target key start
LH: loop header
LB: loop body
LE: loop exit
PB: predicated region body
PF: predicated region fallthrough
CT: control target
= control target key end

     0   :  { %8 = vsyncpa [#allocation3], 0  ;;  %s226_s0 = inlined_call_operand.hbm [shape: f32[8,8], index: 0, kind: input, shape index: {}]   ;;  %s227_s1 = inlined_call_operand.hbm [shape: bf16[8,128], index: 1, kind: input, shape index: {}]   ;;  %s228_s2 = inlined_call_operand.vmem [shape: f32[1,128], index: 2, kind: input, shape index: {}]   ;;  %s229_s3 = inlined_call_operand.hbm [shape: f32[8,128], index: 3, kind: output, shape index: {}]  }
   0x1   :  { %9 = vsyncpa [#allocation6], 0 }
   0x2   :  { %10 = vsyncpa [#allocation4], 0  ;;  %s16_s14 = sshll.u32 %s226_s0, 4  ;;  %s191_s15 = smov [#allocation2]   ;;  %s17_s14 = int_to_ptr.hbm [resolvable:$true] %s16_s14 }
   0x3   :  { %s18_s16 = sshll.u32 %s191_s15, 4  ;;  %s27_s19 = sshll.u32 %s227_s1, 4  ;;  %s19_s16 = int_to_ptr.vmem [resolvable:$true] %s18_s16  ;;  %s28_s19 = int_to_ptr.hbm [resolvable:$true] %s27_s19 }
   0x4   :  { %21 = dma.hbm_to_vmem [thread:$0]  %s17_s14, 128, %s19_s16, [#allocation3]  }
   0x5   :  { %s192_s20 = smov [#allocation5]  }
   0x6   :  { %s29_s21 = sshll.u32 %s192_s20, 4  ;;  %s30_s21 = int_to_ptr.vmem [resolvable:$true] %s29_s21 }
   0x7   :  { %32 = dma.hbm_to_vmem [thread:$0]  %s28_s19, 64, %s30_s21, [#allocation6]  }
   0x8   :  { %185 = dma.done.wait [#allocation3], 128  }
   0x9   :  { %186 = vsyncadd [#allocation3], 4294967168 }
   0xa   :  { %187 = dma.done.wait [#allocation6], 64  }
   0xb   :  { %188 = vsyncadd [#allocation6], 4294967232  ;;  %vm55_vm0 = vcmask 1043456   ;;  %v46_v0 = vld [vmem:[#allocation5] sm:$0xf]  ;;  %v44_v1 = vld [vmem:[#allocation2] sm:$0xff] }
   0xc   :  { %v57_v2 = vsel %vm55_vm0, %v46_v0, 0  ;;  %v45_v3 = vpack.c.bf16 %v44_v1, %v44_v1  ;;  %vm51_vm1 = vcmask 64512   ;;  %v110_v4 = vld [vmem:[%s228_s2] ss:$0 sm:$0xff]  ;;  %s193_s22 = smov [#allocation7]   ;;  %s95_s25 = sshll.u32 %s229_s3, 4  ;;  %s96_s25 = int_to_ptr.hbm [resolvable:$true] %s95_s25 }
   0xd   :  { %66 = vmatpush.bf16.msra.mxu0 %v57_v2  ;;  %s93_s23 = sshll.u32 %s193_s22, 4  ;;  %s94_s23 = int_to_ptr.vmem [resolvable:$true] %s93_s23 }
  0x10   :  { %106 = vmatmul.msk.bf16.vlgmr.msra.gmra.mxu0 %vm51_vm1, %v45_v3 }
  0x8d   :  { %v68_v5 = vpop.f32.mrf.mxu0 }
  0x8e   :  { %v69_v6 = vadd.f32 %v110_v4, %v68_v5 }
  0x90   :  { %v72_v7 = vmul.f32 %v69_v6, %v69_v6 }
  0x92   :  { %73 = vadd.xlane.f32.xlu0 %v72_v7 }
  0x95   :  { %v70_v8 = vpop.f32.mrf.mxu0 }
 0x105   :  { %v74_v9 = vpop.xlane.xlu0 %73 }
 0x106   :  { %v75_v10 = vmax.f32 %v74_v9, 1e-24 }
 0x108   :  { %111 = vrsqrt.f32 %v75_v10  ;;  %vm82_vm3 = vweird.f32 %v75_v10 }
 0x10e   :  { %v112_v11 = vpop.eup %111 }
 0x10f   :  { %v77_v12 = vmul.f32 %v112_v11, %v75_v10  ;;  %vm83_vm2 = vweird.f32 %v112_v11 }
 0x110   :  { %vm84_vm4 = vmor %vm82_vm3, %vm83_vm2 }
 0x111   :  { %v78_v13 = vmul.f32 %v112_v11, %v77_v12 }
 0x113   :  { %v79_v14 = vmul.f32 0.5, %v78_v13 }
 0x115   :  { %v80_v15 = vsub.f32 1.5, %v79_v14 }
 0x117   :  { %v81_v16 = vmul.f32 %v112_v11, %v80_v15 }
 0x119   :  { %v85_v17 = vsel %vm84_vm4, %v112_v11, %v81_v16 }
 0x11a   :  { %v86_v18 = vmul.f32 %v85_v17, %v69_v6 }
 0x11c   :  { %87 = vst [vmem:[#allocation7] sm:$0xff] %v86_v18 }
 0x11d   :  { %98 = dma.vmem_to_hbm [thread:$0]  %s94_s23, 128, %s96_s25, [#allocation4]  }
 0x11e   :  { %189 = dma.done.wait [#allocation4], 128  }
 0x11f   :  { %190 = vsyncadd [#allocation4], 4294967168 }
 0x120   :  { %103 = vsyncpa [#allocation3], 1 }
 0x121   :  { %104 = vsyncpa [#allocation6], 1 }
 0x122   :  { %105 = vsyncpa [#allocation4], 1 }

</bundles_post_ra>
